<compile_context>
chip_gen: v6e
topology: v6e:2x2x1
jax: 0.10.0
libtpu: 0.0.40
codegen_flags: <defaults>
</compile_context>

<pallas_src>
import functools

import jax
import jax.numpy as jnp
from jax.experimental import pallas as pl
from jax.experimental.pallas import tpu as pltpu


LEAKY_SLOPE = 0.01  # torch.nn.functional.leaky_relu default negative_slope
LANE = 128          # TPU lane width
SUBLANE = 8         # TPU sublane width (f32)


def _round_up(x, m):
    return ((x + m - 1) // m) * m


def _actor_kernel(n_layers, action_dim, *refs):
    """refs = (x_ref, w0, b0, w1, b1, ..., out_ref).

    x_ref:  (TB, S_pad)        f32, batch tile of states
    w_i:    (in_pad, out_pad)  zero-padded weights, b_i: (1, out_pad) f32
    out_ref:(TB, A_pad)        f32 softmax probabilities (padded cols = 0)
    """
    x_ref = refs[0]
    out_ref = refs[-1]
    param_refs = refs[1:-1]

    h = x_ref[...]                       # f32 activations
    for i in range(n_layers):
        w = param_refs[2 * i][...]
        b = param_refs[2 * i + 1][...]
        lhs = h if h.dtype == w.dtype else h.astype(w.dtype)
        h = jnp.dot(lhs, w, preferred_element_type=jnp.float32)   # MXU
        h = h + b.astype(jnp.float32)
        if i < n_layers - 1:
            # leaky_relu (VPU)
            h = jnp.where(h > 0, h, LEAKY_SLOPE * h)

    # Mask padded action columns to -inf so they vanish from the softmax.
    a_pad = h.shape[-1]
    if a_pad != action_dim:
        col = jax.lax.broadcasted_iota(jnp.int32, h.shape, 1)
        h = jnp.where(col < action_dim, h, -jnp.inf)

    # Numerically stable softmax along the last (lane) axis.
    # Exact division (the divide is negligible next to the matmuls and the
    # approx EUP reciprocal is not accurate enough for tight tolerances).
    m = jnp.max(h, axis=-1, keepdims=True)
    e = jnp.exp(h - m)
    denom = jnp.sum(e, axis=-1, keepdims=True)
    out_ref[...] = (e / denom).astype(out_ref.dtype)


def actor_forward(state, params, *, block_batch=256, param_dtype=jnp.float32):
    """Actor forward pass on TPU via Pallas.

    state:  (B, state_dim) float32
    params: list of (W, b) with W=(in_features, out_features), b=(1, out_features)
            (i.e. PyTorch weights pre-transposed so the kernel computes x @ W + b)
    """
    n_layers = len(params)
    B, S = state.shape
    action_dim = params[-1][0].shape[1]

    # ---- pad feature dims to multiples of 128 (lane-dense), batch to tile ----
    dims = [S] + [w.shape[1] for w, _ in params]
    dims_pad = [_round_up(d, LANE) for d in dims]

    TB = min(block_batch, _round_up(B, SUBLANE))
    B_pad = _round_up(B, TB)

    state_p = jnp.pad(state.astype(jnp.float32),
                      ((0, B_pad - B), (0, dims_pad[0] - S)))

    flat_params = []
    for i, (w, b) in enumerate(params):
        in_d, out_d = w.shape
        in_p, out_p = dims_pad[i], dims_pad[i + 1]
        w_p = jnp.pad(w, ((0, in_p - in_d), (0, out_p - out_d))).astype(param_dtype)
        b_p = jnp.pad(b, ((0, 0), (0, out_p - out_d))).astype(jnp.float32)
        flat_params.append(w_p)
        flat_params.append(b_p)

    A_pad = dims_pad[-1]
    grid = (B_pad // TB,)

    # ---- BlockSpecs: batch-tiled activations, grid-resident weights ----
    in_specs = [pl.BlockSpec((TB, dims_pad[0]), lambda i: (i, 0))]
    for i in range(n_layers):
        in_p, out_p = dims_pad[i], dims_pad[i + 1]
        in_specs.append(pl.BlockSpec((in_p, out_p), lambda i: (0, 0)))   # W_i
        in_specs.append(pl.BlockSpec((1, out_p), lambda i: (0, 0)))      # b_i
    out_spec = pl.BlockSpec((TB, A_pad), lambda i: (i, 0))

    # ---- cost estimate for the XLA scheduler ----
    flops = 2 * B_pad * sum(dims_pad[i] * dims_pad[i + 1] for i in range(n_layers))
    bytes_accessed = (
        state_p.size * 4
        + sum(int(p.size) * p.dtype.itemsize for p in flat_params)
        + B_pad * A_pad * 4
    )
    cost = pl.CostEstimate(flops=flops,
                           transcendentals=B_pad * A_pad,
                           bytes_accessed=bytes_accessed)

    kernel = functools.partial(_actor_kernel, n_layers, action_dim)

    out_padded = pl.pallas_call(
        kernel,
        out_shape=jax.ShapeDtypeStruct((B_pad, A_pad), jnp.float32),
        grid=grid,
        in_specs=in_specs,
        out_specs=out_spec,
        compiler_params=pltpu.CompilerParams(
            dimension_semantics=("parallel",)),
        cost_estimate=cost,
    )(state_p, *flat_params)

    return out_padded[:B, :action_dim]


def init_actor_params(key, state_dim, action_dim, hidden_size=10, hidden_layers=0):
    """Deterministic init mimicking nn.Linear default (uniform +/- 1/sqrt(fan_in)).

    W stored as (in_features, out_features) so the kernel computes x @ W + b.
    """
    dims = [state_dim] + [hidden_size] * (hidden_layers + 1) + [action_dim]
    params = []
    for i in range(len(dims) - 1):
        fan_in, fan_out = dims[i], dims[i + 1]
        key, kw, kb = jax.random.split(key, 3)
        bound = 1.0 / (fan_in ** 0.5)
        w = jax.random.uniform(kw, (fan_in, fan_out), jnp.float32, -bound, bound)
        b = jax.random.uniform(kb, (1, fan_out), jnp.float32, -bound, bound)
        params.append((w, b))
    return params


def actor_forward_ref(state, params):
    """Pure-JAX reference for correctness checking."""
    h = state
    n = len(params)
    for i, (w, b) in enumerate(params):
        h = h @ w + b
        if i < n - 1:
            h = jnp.where(h > 0, h, LEAKY_SLOPE * h)
    return jax.nn.softmax(h, axis=-1)


if __name__ == "__main__":
    key = jax.random.PRNGKey(0)

    # --- test 1: Actor default-style shapes (small) ---
    batch = 8
    state_dim = 16
    action_dim = 8
    hidden_size = 32
    hidden_layers = 0  # Actor default

    k_params, k_state, k2 = jax.random.split(key, 3)
    params = init_actor_params(k_params, state_dim, action_dim,
                               hidden_size=hidden_size,
                               hidden_layers=hidden_layers)
    state = jax.random.normal(k_state, (batch, state_dim), jnp.float32)

    out = actor_forward(state, params)
    out = jax.block_until_ready(out)
    ref = actor_forward_ref(state, params)
    assert out.shape == (batch, action_dim)
    assert jnp.allclose(out, ref, atol=2e-5, rtol=2e-5), "mismatch vs reference (test 1)"
    assert jnp.allclose(jnp.sum(out, axis=-1), 1.0, atol=1e-5)

    # --- test 2: exercise the batch grid (multiple tiles + batch padding) ---
    k_params2, k_state2 = jax.random.split(k2)
    params2 = init_actor_params(k_params2, state_dim, action_dim,
                                hidden_size=hidden_size, hidden_layers=1)
    batch2 = 300  # not a multiple of the tile -> exercises batch padding
    state2 = jax.random.normal(k_state2, (batch2, state_dim), jnp.float32)
    out2 = jax.block_until_ready(
        actor_forward(state2, params2, block_batch=128))
    ref2 = actor_forward_ref(state2, params2)
    assert out2.shape == (batch2, action_dim)
    assert jnp.allclose(out2, ref2, atol=2e-5, rtol=2e-5), "mismatch vs reference (test 2)"
    assert jnp.allclose(jnp.sum(out2, axis=-1), 1.0, atol=1e-5)

    print("KERNEL_OK")
</pallas_src>

<mosaic_0001>
module attributes {stable_mosaic.version = 11 : i64} {
  func.func @_actor_kernel(%arg0: i32, %arg1: memref<8x128xf32, #tpu.memory_space<vmem>>, %arg2: memref<128x128xf32, #tpu.memory_space<vmem>>, %arg3: memref<1x128xf32, #tpu.memory_space<vmem>>, %arg4: memref<128x128xf32, #tpu.memory_space<vmem>>, %arg5: memref<1x128xf32, #tpu.memory_space<vmem>>, %arg6: memref<8x128xf32, #tpu.memory_space<vmem>>) attributes {dimension_semantics = [#tpu.dimension_semantics<parallel>], iteration_bounds = array<i64: 1>, scalar_prefetch = 0 : i64, scratch_operands = 0 : i64, tpu.core_type = #tpu.core_type<tc>, window_params = [{transform_indices = @transform_0, window_bounds = array<i64: 8, 128>}, {pipeline_mode = #tpu.pipeline_mode<synchronous>, transform_indices = @transform_1, window_bounds = array<i64: 128, 128>}, {pipeline_mode = #tpu.pipeline_mode<synchronous>, transform_indices = @transform_2, window_bounds = array<i64: 1, 128>}, {pipeline_mode = #tpu.pipeline_mode<synchronous>, transform_indices = @transform_3, window_bounds = array<i64: 128, 128>}, {pipeline_mode = #tpu.pipeline_mode<synchronous>, transform_indices = @transform_4, window_bounds = array<i64: 1, 128>}, {transform_indices = @transform_5, window_bounds = array<i64: 8, 128>}]} {
    %c0 = arith.constant 0 : index
    %c0_0 = arith.constant 0 : index
    %0 = vector.load %arg1[%c0, %c0_0] : memref<8x128xf32, #tpu.memory_space<vmem>>, vector<8x128xf32>
    %c0_1 = arith.constant 0 : index
    %c0_2 = arith.constant 0 : index
    %1 = vector.load %arg2[%c0_1, %c0_2] : memref<128x128xf32, #tpu.memory_space<vmem>>, vector<128x128xf32>
    %c0_3 = arith.constant 0 : index
    %c0_4 = arith.constant 0 : index
    %2 = vector.load %arg3[%c0_3, %c0_4] : memref<1x128xf32, #tpu.memory_space<vmem>>, vector<1x128xf32>
    %cst = arith.constant dense<0.000000e+00> : vector<8x128xf32>
    %3 = tpu.matmul %0, %1, %cst {dimension_numbers = #tpu.dot_dimension_numbers<[1], [0], [0], [1], [0, 0, 1, 1], [], []>} : vector<8x128xf32>, vector<128x128xf32>, vector<8x128xf32> -> vector<8x128xf32>
    %4 = vector.broadcast %2 : vector<1x128xf32> to vector<8x128xf32>
    %5 = arith.addf %3, %4 : vector<8x128xf32>
    %cst_5 = arith.constant 0.000000e+00 : f32
    %6 = vector.broadcast %cst_5 : f32 to vector<8x128xf32>
    %7 = arith.cmpf ogt, %5, %6 : vector<8x128xf32>
    %cst_6 = arith.constant 0.00999999977 : f32
    %8 = vector.broadcast %cst_6 : f32 to vector<8x128xf32>
    %9 = arith.mulf %8, %5 : vector<8x128xf32>
    %10 = arith.select %7, %5, %9 : vector<8x128xi1>, vector<8x128xf32>
    %c0_7 = arith.constant 0 : index
    %c0_8 = arith.constant 0 : index
    %11 = vector.load %arg4[%c0_7, %c0_8] : memref<128x128xf32, #tpu.memory_space<vmem>>, vector<128x128xf32>
    %c0_9 = arith.constant 0 : index
    %c0_10 = arith.constant 0 : index
    %12 = vector.load %arg5[%c0_9, %c0_10] : memref<1x128xf32, #tpu.memory_space<vmem>>, vector<1x128xf32>
    %cst_11 = arith.constant dense<0.000000e+00> : vector<8x128xf32>
    %13 = tpu.matmul %10, %11, %cst_11 {dimension_numbers = #tpu.dot_dimension_numbers<[1], [0], [0], [1], [0, 0, 1, 1], [], []>} : vector<8x128xf32>, vector<128x128xf32>, vector<8x128xf32> -> vector<8x128xf32>
    %14 = vector.broadcast %12 : vector<1x128xf32> to vector<8x128xf32>
    %15 = arith.addf %13, %14 : vector<8x128xf32>
    %16 = tpu.iota {dimensions = array<i32: 1>} : vector<8x128xi32>
    %c8_i32 = arith.constant 8 : i32
    %17 = vector.broadcast %c8_i32 : i32 to vector<8x128xi32>
    %18 = arith.cmpi slt, %16, %17 : vector<8x128xi32>
    %cst_12 = arith.constant 0xFF800000 : f32
    %19 = vector.broadcast %cst_12 : f32 to vector<8x128xf32>
    %20 = arith.select %18, %15, %19 : vector<8x128xi1>, vector<8x128xf32>
    %cst_13 = arith.constant dense<0xFF800000> : vector<8xf32>
    %21 = vector.multi_reduction <maximumf>, %20, %cst_13 [1] : vector<8x128xf32> to vector<8xf32>
    %22 = vector.shape_cast %21 : vector<8xf32> to vector<8x1xf32>
    %23 = vector.broadcast %22 : vector<8x1xf32> to vector<8x128xf32>
    %24 = arith.subf %20, %23 : vector<8x128xf32>
    %25 = math.exp %24 : vector<8x128xf32>
    %cst_14 = arith.constant dense<0.000000e+00> : vector<8xf32>
    %26 = vector.multi_reduction <add>, %25, %cst_14 [1] : vector<8x128xf32> to vector<8xf32>
    %27 = vector.shape_cast %26 : vector<8xf32> to vector<8x1xf32>
    %28 = vector.broadcast %27 : vector<8x1xf32> to vector<8x128xf32>
    %29 = arith.divf %25, %28 : vector<8x128xf32>
    %c0_15 = arith.constant 0 : index
    %c0_16 = arith.constant 0 : index
    %30 = vector.load %arg6[%c0_15, %c0_16] : memref<8x128xf32, #tpu.memory_space<vmem>>, vector<8x128xf32>
    tpu.vector_store %arg6[%c0_15, %c0_16], %29 {strides = array<i32>} : memref<8x128xf32, #tpu.memory_space<vmem>>, vector<8x128xf32>,
    return
  }
  func.func @transform_0(%arg0: i32) -> (i32, i32) {
    %c0_i32 = arith.constant 0 : i32
    %c0_i32_0 = arith.constant 0 : i32
    return %arg0, %c0_i32 : i32, i32
  }
  func.func @transform_1(%arg0: i32) -> (i32, i32) {
    %c0_i32 = arith.constant 0 : i32
    %c0_i32_0 = arith.constant 0 : i32
    %c0_i32_1 = arith.constant 0 : i32
    return %c0_i32, %c0_i32_0 : i32, i32
  }
  func.func @transform_2(%arg0: i32) -> (i32, i32) {
    %c0_i32 = arith.constant 0 : i32
    %c0_i32_0 = arith.constant 0 : i32
    %c0_i32_1 = arith.constant 0 : i32
    return %c0_i32, %c0_i32_0 : i32, i32
  }
  func.func @transform_3(%arg0: i32) -> (i32, i32) {
    %c0_i32 = arith.constant 0 : i32
    %c0_i32_0 = arith.constant 0 : i32
    %c0_i32_1 = arith.constant 0 : i32
    return %c0_i32, %c0_i32_0 : i32, i32
  }
  func.func @transform_4(%arg0: i32) -> (i32, i32) {
    %c0_i32 = arith.constant 0 : i32
    %c0_i32_0 = arith.constant 0 : i32
    %c0_i32_1 = arith.constant 0 : i32
    return %c0_i32, %c0_i32_0 : i32, i32
  }
  func.func @transform_5(%arg0: i32) -> (i32, i32) {
    %c0_i32 = arith.constant 0 : i32
    %c0_i32_0 = arith.constant 0 : i32
    return %arg0, %c0_i32 : i32, i32
  }
}

</mosaic_0001>

<bundles_post_ra>
// kernel: tpu_custom_call.1
= control target key start
LH: loop header
LB: loop body
LE: loop exit
PB: predicated region body
PF: predicated region fallthrough
CT: control target
= control target key end

     0   :  { %10 = vsyncpa [#allocation3], 0  ;;  %s574_s0 = inlined_call_operand.hbm [shape: f32[8,128], index: 0, kind: input, shape index: {}]   ;;  %s575_s1 = inlined_call_operand.hbm [shape: f32[128,128], index: 1, kind: input, shape index: {}]   ;;  %s576_s2 = inlined_call_operand.vmem [shape: f32[1,128], index: 2, kind: input, shape index: {}]   ;;  %s577_s3 = inlined_call_operand.hbm [shape: f32[128,128], index: 3, kind: input, shape index: {}]   ;;  %s578_s4 = inlined_call_operand.vmem [shape: f32[1,128], index: 4, kind: input, shape index: {}]   ;;  %s579_s5 = inlined_call_operand.hbm [shape: f32[8,128], index: 5, kind: output, shape index: {}]  }
   0x1   :  { %11 = vsyncpa [#allocation6], 0 }
   0x2   :  { %12 = vsyncpa [#allocation4], 0  ;;  %s484_s18 = smov [#allocation5]  }
   0x3   :  { %s28_s19 = sshll.u32 %s484_s18, 4  ;;  %s29_s19 = int_to_ptr.vmem [resolvable:$true] %s28_s19 }
   0x4   :  { %s406_s20 = scalar_lea.vmem %s29_s19, 2048  ;;  %p411_p1 = scmp.lt.s32.totalorder %s29_s19, %s29_s19 }
   0x5   :  { %p407_p0 = scmp.ne.s32.totalorder %s29_s19, %s406_s20  ;;  %p412_p2 = scmp.lt.s32.totalorder %s406_s20, %s406_s20 }
   0x7   :  { %p413_p3 = por %p412_p2, %p411_p1 }
   0x9   :  { %p414_p4 = pnand %p413_p3, %p407_p0 }
   0xb   :  { %417 = shalt.err (!%p414_p4)
}
   0xc   :  { %s485_s21 = smov 128   ;;  %s486_s22 = smov 8  }
   0xd   :  { %34 = dma.hbm_to_vmem [thread:$0]  %s575_s1, 2048, %s29_s19, [#allocation6], %s485_s21, %s485_s21, %s486_s22  }
   0xe   :  { %s487_s25 = smov [#allocation2]   ;;  %s488_s27 = smov [#allocation7]  }
   0xf   :  { %s19_s26 = sshll.u32 %s487_s25, 4  ;;  %s42_s28 = sshll.u32 %s488_s27, 4  ;;  %s20_s26 = int_to_ptr.vmem [resolvable:$true] %s19_s26  ;;  %s43_s28 = int_to_ptr.vmem [resolvable:$true] %s42_s28 }
  0x10   :  { %s426_s29 = scalar_lea.vmem %s20_s26, 128  ;;  %p431_p6 = scmp.lt.s32.totalorder %s20_s26, %s20_s26 }
  0x11   :  { %p427_p5 = scmp.ne.s32.totalorder %s20_s26, %s426_s29  ;;  %p432_p7 = scmp.lt.s32.totalorder %s426_s29, %s426_s29 }
  0x13   :  { %p433_p8 = por %p432_p7, %p431_p6 }
  0x15   :  { %p434_p9 = pnand %p433_p8, %p427_p5 }
  0x17   :  { %437 = shalt.err (!%p434_p9)
}
  0x18   :  { %22 = dma.hbm_to_vmem [thread:$0]  %s574_s0, 128, %s20_s26, [#allocation3]  }
  0x19   :  { %s446_s7 = scalar_lea.vmem %s43_s28, 2048  ;;  %p451_p11 = scmp.lt.s32.totalorder %s43_s28, %s43_s28 }
  0x1a   :  { %p447_p10 = scmp.ne.s32.totalorder %s43_s28, %s446_s7  ;;  %p452_p12 = scmp.lt.s32.totalorder %s446_s7, %s446_s7 }
  0x1c   :  { %p453_p13 = por %p452_p12, %p451_p11 }
  0x1e   :  { %p454_p0 = pnand %p453_p13, %p447_p10 }
  0x20   :  { %457 = shalt.err (!%p454_p0)
}
  0x21   :  { %48 = dma.hbm_to_vmem [thread:$0]  %s577_s3, 2048, %s43_s28, [#allocation6], %s485_s21, %s485_s21, %s486_s22  }
  0x22   :  { %478 = dma.done.wait [#allocation3], 128  }
  0x23   :  { %479 = vsyncadd [#allocation3], 4294967168 }
  0x24   :  { %480 = dma.done.wait [#allocation6], 4096  }
  0x25   :  { %481 = vsyncadd [#allocation6], 4294963200  ;;  %v489_v0 = vmov 0.0   ;;  %vm490_vm0 = vmmov 0   ;;  %v76_v1 = vld [vmem:[#allocation5 + $0x78] sm:$0xff]  ;;  %v75_v2 = vld [vmem:[#allocation5 + $0x70] sm:$0xff]  ;;  %v250_v40 = vlaneseq }
  0x26   :  { %316 = vmatprep.subr.mxu0 %v489_v0  ;;  %348 = vmatprep.mubr.msk.f32.mxu0 %vm490_vm0, %v489_v0  ;;  %v74_v3 = vld [vmem:[#allocation5 + $0x68] sm:$0xff]  ;;  %v73_v4 = vld [vmem:[#allocation5 + $0x60] sm:$0xff]  ;;  %v172_v5 = vld [vmem:[#allocation7 + $0x78] sm:$0xff] }
  0x27   :  { %351 = vmatprep.subr.mxu1 %v489_v0  ;;  %383 = vmatprep.mubr.msk.f32.mxu1 %vm490_vm0, %v489_v0  ;;  %v72_v6 = vld [vmem:[#allocation5 + $0x58] sm:$0xff]  ;;  %v171_v7 = vld [vmem:[#allocation7 + $0x70] sm:$0xff]  ;;  %v170_v8 = vld [vmem:[#allocation7 + $0x68] sm:$0xff]  ;;  %v251_v41 = vand.u32 127, %v250_v40 }
  0x28   :  { %317 = vmatpush3.msra.mxu0 %v76_v1  ;;  %352 = vmatpush3.msra.mxu1 %v172_v5  ;;  %v71_v9 = vld [vmem:[#allocation5 + $0x50] sm:$0xff]  ;;  %v169_v10 = vld [vmem:[#allocation7 + $0x60] sm:$0xff]  ;;  %v70_v11 = vld [vmem:[#allocation5 + $0x48] sm:$0xff] }
  0x29   :  { %318 = vmatprep.subr.mxu0 %v489_v0  ;;  %353 = vmatprep.subr.mxu1 %v489_v0  ;;  %v168_v12 = vld [vmem:[#allocation7 + $0x58] sm:$0xff]  ;;  %v69_v13 = vld [vmem:[#allocation5 + $0x40] sm:$0xff]  ;;  %v167_v14 = vld [vmem:[#allocation7 + $0x50] sm:$0xff]  ;;  %vm252_vm2 = vcmp.lt.s32.totalorder %v251_v41, 8 }
  0x2a   :  { %319 = vmatpush3.msra.mxu0 %v75_v2  ;;  %354 = vmatpush3.msra.mxu1 %v171_v7  ;;  %v68_v15 = vld [vmem:[#allocation5 + $0x38] sm:$0xff]  ;;  %v166_v16 = vld [vmem:[#allocation7 + $0x48] sm:$0xff]  ;;  %v67_v17 = vld [vmem:[#allocation5 + $0x30] sm:$0xff] }
  0x2b   :  { %320 = vmatprep.subr.mxu0 %v489_v0  ;;  %355 = vmatprep.subr.mxu1 %v489_v0  ;;  %v165_v18 = vld [vmem:[#allocation7 + $0x40] sm:$0xff]  ;;  %v66_v19 = vld [vmem:[#allocation5 + $0x28] sm:$0xff]  ;;  %v164_v20 = vld [vmem:[#allocation7 + $0x38] sm:$0xff] }
  0x2c   :  { %321 = vmatpush3.msra.mxu0 %v74_v3  ;;  %356 = vmatpush3.msra.mxu1 %v170_v8  ;;  %v65_v21 = vld [vmem:[#allocation5 + $0x20] sm:$0xff]  ;;  %v163_v22 = vld [vmem:[#allocation7 + $0x30] sm:$0xff]  ;;  %v64_v23 = vld [vmem:[#allocation5 + $0x18] sm:$0xff] }
  0x2d   :  { %322 = vmatprep.subr.mxu0 %v489_v0  ;;  %357 = vmatprep.subr.mxu1 %v489_v0  ;;  %v162_v24 = vld [vmem:[#allocation7 + $0x28] sm:$0xff]  ;;  %v63_v25 = vld [vmem:[#allocation5 + $0x10] sm:$0xff]  ;;  %v161_v26 = vld [vmem:[#allocation7 + $0x20] sm:$0xff] }
  0x2e   :  { %323 = vmatpush3.msra.mxu0 %v73_v4  ;;  %358 = vmatpush3.msra.mxu1 %v169_v10  ;;  %v62_v27 = vld [vmem:[#allocation5 + $0x8] sm:$0xff]  ;;  %v160_v28 = vld [vmem:[#allocation7 + $0x18] sm:$0xff]  ;;  %v61_v29 = vld [vmem:[#allocation5] sm:$0xff] }
  0x2f   :  { %324 = vmatprep.subr.mxu0 %v489_v0  ;;  %359 = vmatprep.subr.mxu1 %v489_v0  ;;  %v60_v30 = vld [vmem:[#allocation2] sm:$0xff]  ;;  %v159_v31 = vld [vmem:[#allocation7 + $0x10] sm:$0xff]  ;;  %v158_v32 = vld [vmem:[#allocation7 + $0x8] sm:$0xff] }
  0x30   :  { %325 = vmatpush3.msra.mxu0 %v72_v6  ;;  %360 = vmatpush3.msra.mxu1 %v168_v12  ;;  %v157_v33 = vld [vmem:[#allocation7] sm:$0xff]  ;;  %v280_v34 = vld [vmem:[%s576_s2] ss:$0 sm:$0xff]  ;;  %s491_s2 = smov [#allocation8]  }
  0x31   :  { %326 = vmatprep.subr.mxu0 %v489_v0  ;;  %361 = vmatprep.subr.mxu1 %v489_v0  ;;  %v281_v42 = vld [vmem:[%s578_s4] ss:$0 sm:$0xff]  ;;  %s270_s11 = sshll.u32 %s491_s2, 4  ;;  %s271_s11 = int_to_ptr.vmem [resolvable:$true] %s270_s11 }
  0x32   :  { %327 = vmatpush3.msra.mxu0 %v71_v9  ;;  %362 = vmatpush3.msra.mxu1 %v167_v14  ;;  %s458_s4 = scalar_lea.vmem %s271_s11, 128  ;;  %p463_p2 = scmp.lt.s32.totalorder %s271_s11, %s271_s11 }
  0x33   :  { %328 = vmatprep.subr.mxu0 %v489_v0  ;;  %363 = vmatprep.subr.mxu1 %v489_v0  ;;  %p459_p1 = scmp.ne.s32.totalorder %s271_s11, %s458_s4  ;;  %p464_p3 = scmp.lt.s32.totalorder %s458_s4, %s458_s4 }
  0x34   :  { %329 = vmatpush3.msra.mxu0 %v70_v11  ;;  %364 = vmatpush3.msra.mxu1 %v166_v16 }
  0x35   :  { %330 = vmatprep.subr.mxu0 %v489_v0  ;;  %365 = vmatprep.subr.mxu1 %v489_v0  ;;  %p465_p4 = por %p464_p3, %p463_p2 }
  0x36   :  { %331 = vmatpush3.msra.mxu0 %v69_v13  ;;  %366 = vmatpush3.msra.mxu1 %v165_v18 }
  0x37   :  { %332 = vmatprep.subr.mxu0 %v489_v0  ;;  %367 = vmatprep.subr.mxu1 %v489_v0  ;;  %p466_p5 = pnand %p465_p4, %p459_p1 }
  0x38   :  { %333 = vmatpush3.msra.mxu0 %v68_v15  ;;  %368 = vmatpush3.msra.mxu1 %v164_v20 }
  0x39   :  { %334 = vmatprep.subr.mxu0 %v489_v0  ;;  %369 = vmatprep.subr.mxu1 %v489_v0 }
  0x3a   :  { %335 = vmatpush3.msra.mxu0 %v67_v17  ;;  %370 = vmatpush3.msra.mxu1 %v163_v22 }
  0x3b   :  { %336 = vmatprep.subr.mxu0 %v489_v0  ;;  %371 = vmatprep.subr.mxu1 %v489_v0 }
  0x3c   :  { %337 = vmatpush3.msra.mxu0 %v66_v19  ;;  %372 = vmatpush3.msra.mxu1 %v162_v24 }
  0x3d   :  { %338 = vmatprep.subr.mxu0 %v489_v0  ;;  %373 = vmatprep.subr.mxu1 %v489_v0 }
  0x3e   :  { %339 = vmatpush3.msra.mxu0 %v65_v21  ;;  %374 = vmatpush3.msra.mxu1 %v161_v26 }
  0x3f   :  { %340 = vmatprep.subr.mxu0 %v489_v0  ;;  %375 = vmatprep.subr.mxu1 %v489_v0 }
  0x40   :  { %341 = vmatpush3.msra.mxu0 %v64_v23  ;;  %376 = vmatpush3.msra.mxu1 %v160_v28 }
  0x41   :  { %342 = vmatprep.subr.mxu0 %v489_v0  ;;  %377 = vmatprep.subr.mxu1 %v489_v0 }
  0x42   :  { %343 = vmatpush3.msra.mxu0 %v63_v25  ;;  %378 = vmatpush3.msra.mxu1 %v159_v31 }
  0x43   :  { %344 = vmatprep.subr.mxu0 %v489_v0  ;;  %379 = vmatprep.subr.mxu1 %v489_v0 }
  0x44   :  { %345 = vmatpush3.msra.mxu0 %v62_v27  ;;  %380 = vmatpush3.msra.mxu1 %v158_v32 }
  0x45   :  { %346 = vmatprep.subr.mxu0 %v489_v0  ;;  %381 = vmatprep.subr.mxu1 %v489_v0 }
  0x46   :  { %347 = vmatpush3.msra.mxu0 %v61_v29  ;;  %382 = vmatpush3.msra.mxu1 %v157_v33 }
  0x47   :  { %349 = vmatmul.mubr.f32.vlgmr.msra.gmra.mxu0 %v60_v30 }
 0x107   :  { %v150_v35 = vpop.f32.mrf.mxu0 }
 0x108   :  { %v151_v36 = vadd.f32 %v280_v34, %v150_v35 }
 0x109   :  { %v350_v37 = vpop.f32.mrf.mxu0 }
 0x10a   :  { %v155_v38 = vmul.f32 0.01, %v151_v36  ;;  %vm154_vm1 = vcmp.gt.f32.partialorder %v151_v36, 0.0 }
 0x10c   :  { %v156_v39 = vsel %vm154_vm1, %v151_v36, %v155_v38 }
 0x10d   :  { %384 = vmatmul.mubr.f32.vlgmr.msra.gmra.mxu1 %v156_v39 }
 0x1cd   :  { %v246_v43 = vpop.f32.mrf.mxu1 }
 0x1ce   :  { %v247_v44 = vadd.f32 %v281_v42, %v246_v43 }
 0x1cf   :  { %v385_v45 = vpop.f32.mrf.mxu1 }
 0x1d0   :  { %v253_v46 = vsel %vm252_vm2, %v247_v44, -inf }
 0x1d1   :  { %254 = vmax.xlane.f32.xlu0 %v253_v46 }
 0x25a   :  { %v255_v47 = vpop.xlane.xlu0 %254 }
 0x25b   :  { %v256_v48 = vsub.f32 %v253_v46, %v255_v47 }
 0x25d   :  { %v257_v49 = vmul.f32 1.442695, %v256_v48 }
 0x25f   :  { %394 = vpow2.f32 %v257_v49 }
 0x26c   :  { %v395_v50 = vpop.eup %394 }
 0x26d   :  { %259 = vadd.xlane.f32.xlu0 %v395_v50 }
 0x2f6   :  { %v260_v51 = vpop.xlane.xlu0 %259 }
 0x2f7   :  { %396 = vrcp.f32 %v260_v51 }
 0x304   :  { %v397_v52 = vpop.eup %396 }
 0x305   :  { %v262_v53 = vmul.f32 %v397_v52, %v395_v50 }
 0x307   :  { %263 = vst [vmem:[#allocation8] sm:$0xff] %v262_v53 }
 0x308   :  { %469 = shalt.err (!%p466_p5)
}
 0x309   :  { %273 = dma.vmem_to_hbm [thread:$0]  %s271_s11, 128, %s579_s5, [#allocation4]  }
 0x30a   :  { %482 = dma.done.wait [#allocation4], 128  }
 0x30b   :  { %483 = vsyncadd [#allocation4], 4294967168 }
 0x30c   :  { %277 = vsyncpa [#allocation3], 1 }
 0x30d   :  { %278 = vsyncpa [#allocation6], 1 }
 0x30e   :  { %279 = vsyncpa [#allocation4], 1 }

</bundles_post_ra>
